<compile_context>
chip_gen: v7x
topology: tpu7x:2x2x1
jax: 0.10.0
libtpu: 0.0.40
codegen_flags: <defaults>
</compile_context>

<pallas_src>
import functools

import jax
import jax.numpy as jnp
from jax.experimental import pallas as pl
from jax.experimental.pallas import tpu as pltpu

LANES = 128
SUBLANES = 8
CHUNK = 64              # rows processed per inner fori_loop step (multiple of SUBLANES)
MAX_BLOCK_ROWS = 4096   # (4096, 128) f32 tile = 2 MiB / input / pipeline buffer


def _round_up(n, m):
    return ((n + m - 1) // m) * m


def _int_pow(p, g):
    """p**g for integer g >= 1 using binary exponentiation (VPU multiplies only)."""
    result = None
    base = p
    while g > 0:
        if g & 1:
            result = base if result is None else result * base
        g >>= 1
        if g:
            base = base * base
    return result


def _focal_dice_partial_kernel(x_ref, t_ref, out_ref, *, gamma, binary_targets,
                               block_rows, rows, total_n, num_blocks, needs_mask):
    g = float(gamma)
    g_is_int = g.is_integer() and 0.0 <= g <= 16.0
    full_chunks = block_rows // CHUNK

    def process(mask, n_chunks, block_row0):
        def chunk_body(c, carry):
            f_acc, i_acc, s_acc, t_acc = carry
            start = pl.multiple_of(c * CHUNK, CHUNK)
            x = x_ref[pl.ds(start, CHUNK), :].astype(jnp.float32)
            t = t_ref[pl.ds(start, CHUNK), :].astype(jnp.float32)

            # Stable BCE-with-logits + sigmoid from a single exp(-|x|):
            #   exp(-max(-x,0)) + exp(-x-max(-x,0)) == 1 + exp(-|x|)
            #   sigmoid(x) == where(x>=0, 1, exp(-|x|)) / (1 + exp(-|x|))
            e = jnp.exp(-jnp.abs(x))
            one_p_e = 1.0 + e
            bce = x - x * t + jnp.maximum(-x, 0.0) + jnp.log(one_p_e)
            sig = jnp.where(x >= 0.0, 1.0, e) * pl.reciprocal(one_p_e)  # exact (dice sums)

            # Focal modulation factor = sigmoid(-z)**gamma, z = x*(2t-1).
            if g == 0.0:
                factor = None
            elif binary_targets:
                # For t in {0,1}: sigmoid(-z) == sig + t - 2*sig*t  (pure VPU).
                p = sig + t - 2.0 * sig * t
                if g_is_int:
                    factor = _int_pow(p, int(g))
                else:
                    factor = jnp.exp(g * jnp.log(p))
            else:
                z = x * (t * 2.0 - 1.0)
                e2 = jnp.exp(-jnp.abs(z))
                one_p_e2 = 1.0 + e2
                if g_is_int:
                    p = (jnp.where(z <= 0.0, 1.0, e2)
                         * pl.reciprocal(one_p_e2, approx=True))
                    factor = _int_pow(p, int(g))
                else:
                    invprobs = -(jnp.maximum(z, 0.0) + jnp.log(one_p_e2))  # logsigmoid(-z)
                    factor = jnp.exp(g * invprobs)
            focal = bce if factor is None else factor * bce

            if mask:
                # Only ever executed for the last grid step (and compile-time gated).
                row = jax.lax.broadcasted_iota(jnp.int32, (CHUNK, LANES), 0)
                lane = jax.lax.broadcasted_iota(jnp.int32, (CHUNK, LANES), 1)
                flat = (block_row0 + c * CHUNK + row) * LANES + lane
                valid = flat < total_n
                zero = jnp.zeros_like(focal)
                focal = jnp.where(valid, focal, zero)
                sig = jnp.where(valid, sig, zero)
                t = jnp.where(valid, t, zero)

            # (CHUNK,128) -> (8,128): vreg-aligned sublane-group adds (VPU only).
            def rowsum(v):
                return v.reshape(CHUNK // SUBLANES, SUBLANES, LANES).sum(axis=0)

            return (f_acc + rowsum(focal), i_acc + rowsum(sig * t),
                    s_acc + rowsum(sig), t_acc + rowsum(t))

        zeros = jnp.zeros((SUBLANES, LANES), jnp.float32)
        f_s, i_s, s_s, t_s = jax.lax.fori_loop(
            0, n_chunks, chunk_body, (zeros, zeros, zeros, zeros))
        out_ref[0, 0 * SUBLANES:1 * SUBLANES, :] = f_s
        out_ref[0, 1 * SUBLANES:2 * SUBLANES, :] = i_s
        out_ref[0, 2 * SUBLANES:3 * SUBLANES, :] = s_s
        out_ref[0, 3 * SUBLANES:4 * SUBLANES, :] = t_s

    if not needs_mask:
        process(False, full_chunks, 0)
    elif num_blocks == 1:
        process(True, pl.cdiv(rows, CHUNK), 0)
    else:
        i = pl.program_id(0)
        is_last = i == (num_blocks - 1)
        last_rows = rows - (num_blocks - 1) * block_rows          # static
        last_chunks = pl.cdiv(last_rows, CHUNK)                   # static

        @pl.when(jnp.logical_not(is_last))
        def _():
            process(False, full_chunks, 0)

        @pl.when(is_last)
        def _():
            process(True, last_chunks, (num_blocks - 1) * block_rows)


def focal_dice_loss(x, target, *, alpha, gamma, smooth, binary_targets=False,
                    max_block_rows=MAX_BLOCK_ROWS):
    """alpha * FocalLoss(gamma)(x, target) - log(DiceCoef(smooth)(x, target)).

    Set binary_targets=True only if every target element is exactly 0 or 1 (enables a
    transcendental-free focal-factor path)."""
    assert x.shape == target.shape, "Target size must be the same as input size"
    total_n = 1
    for d in x.shape:
        total_n *= d

    xf = x.reshape(-1)
    tf = target.reshape(-1)
    lane_pad = (-total_n) % LANES
    if lane_pad:
        # Only pad to a multiple of 128 lanes; block-multiple coverage is handled by
        # Pallas partial blocks + last-block-only masking inside the kernel.
        xf = jnp.pad(xf, (0, lane_pad))
        tf = jnp.pad(tf, (0, lane_pad))
    rows = (total_n + lane_pad) // LANES

    # Blocks are multiples of CHUNK rows; cap at half the rows so num_blocks >= 2
    # whenever possible (keeps both v7x TensorCores fed), up to MAX_BLOCK_ROWS.
    block_rows = max(CHUNK, min(int(max_block_rows),
                                _round_up(pl.cdiv(rows, 2), CHUNK)))
    num_blocks = pl.cdiv(rows, block_rows)
    needs_mask = (num_blocks * block_rows * LANES) != total_n

    x2 = xf.reshape(rows, LANES)
    t2 = tf.reshape(rows, LANES)

    kernel = functools.partial(
        _focal_dice_partial_kernel, gamma=float(gamma),
        binary_targets=bool(binary_targets), block_rows=block_rows, rows=rows,
        total_n=total_n, num_blocks=num_blocks, needs_mask=needs_mask)

    partials = pl.pallas_call(
        kernel,
        out_shape=jax.ShapeDtypeStruct((num_blocks, 4 * SUBLANES, LANES), jnp.float32),
        grid_spec=pltpu.PrefetchScalarGridSpec(
            num_scalar_prefetch=0,
            grid=(num_blocks,),
            in_specs=[
                pl.BlockSpec((block_rows, LANES), lambda i: (i, 0)),
                pl.BlockSpec((block_rows, LANES), lambda i: (i, 0)),
            ],
            out_specs=pl.BlockSpec((1, 4 * SUBLANES, LANES), lambda i: (i, 0, 0)),
        ),
        compiler_params=pltpu.CompilerParams(
            dimension_semantics=("parallel",),
            vmem_limit_bytes=32 * 1024 * 1024),
    )(x2, t2)

    # Tiny final combine (cross-lane reduce + dice + log) in plain JAX.
    sums = partials.reshape(num_blocks, 4, SUBLANES, LANES).sum(axis=(0, 2, 3))
    focal_mean = sums[0] / jnp.float32(total_n)
    dice = (2.0 * sums[1] + smooth) / (sums[2] + sums[3] + smooth)
    return alpha * focal_mean - jnp.log(dice)


def focal_dice_loss_ref(x, target, *, alpha, gamma, smooth):
    """Pure-JAX reference mirroring the PyTorch forward."""
    x = x.astype(jnp.float32)
    t = target.astype(jnp.float32)
    max_val = jnp.maximum(-x, 0.0)
    bce = x - x * t + max_val + jnp.log(jnp.exp(-max_val) + jnp.exp(-x - max_val))
    invprobs = jax.nn.log_sigmoid(-x * (t * 2.0 - 1.0))
    focal = jnp.mean(jnp.exp(invprobs * gamma) * bce)
    sig = jax.nn.sigmoid(x).reshape(-1)
    tf = t.reshape(-1)
    inter = jnp.sum(sig * tf)
    dice = (2.0 * inter + smooth) / (jnp.sum(sig) + jnp.sum(tf) + smooth)
    return alpha * focal - jnp.log(dice)


if __name__ == "__main__":
    key = jax.random.PRNGKey(0)
    keys = jax.random.split(key, 8)

    # Case 1: NCHW, binary targets, integer gamma -> binary fast path (no extra exp/recip).
    x = jax.random.normal(keys[0], (2, 4, 16, 16), dtype=jnp.float32)
    t = (jax.random.uniform(keys[1], (2, 4, 16, 16)) > 0.5).astype(jnp.float32)
    out = jax.block_until_ready(
        focal_dice_loss(x, t, alpha=0.5, gamma=2.0, smooth=1.0, binary_targets=True))
    ref = focal_dice_loss_ref(x, t, alpha=0.5, gamma=2.0, smooth=1.0)
    assert jnp.allclose(out, ref, rtol=1e-4, atol=1e-5), (out, ref)

    # Case 2: ragged shape (lane pad + partial block + in-kernel mask), fractional
    # targets, non-integer gamma -> general exp/log path.
    x = jax.random.normal(keys[2], (3, 5, 7, 11), dtype=jnp.float32)
    t = jax.random.uniform(keys[3], (3, 5, 7, 11), dtype=jnp.float32)
    out = jax.block_until_ready(focal_dice_loss(x, t, alpha=0.25, gamma=2.5, smooth=1.0))
    ref = focal_dice_loss_ref(x, t, alpha=0.25, gamma=2.5, smooth=1.0)
    assert jnp.allclose(out, ref, rtol=1e-4, atol=1e-5), (out, ref)

    # Case 3: fractional targets + integer gamma -> approx (EUP vrcp) reciprocal in the
    # focal factor; tolerance loosened accordingly (dice sums stay exact-reciprocal).
    x = jax.random.normal(keys[4], (2, 4, 16, 16), dtype=jnp.float32)
    t = jax.random.uniform(keys[5], (2, 4, 16, 16), dtype=jnp.float32)
    out = jax.block_until_ready(focal_dice_loss(x, t, alpha=0.5, gamma=2.0, smooth=1.0))
    ref = focal_dice_loss_ref(x, t, alpha=0.5, gamma=2.0, smooth=1.0)
    assert jnp.allclose(out, ref, rtol=5e-3, atol=5e-4), (out, ref)

    # Case 4: multi-block ragged input -> exercises the unmasked steady-state branch
    # (block 0) and the masked last-block branch under pl.when.
    x = jax.random.normal(keys[6], (2, 3, 77, 65), dtype=jnp.float32)
    t = (jax.random.uniform(keys[7], (2, 3, 77, 65)) > 0.5).astype(jnp.float32)
    out = jax.block_until_ready(
        focal_dice_loss(x, t, alpha=1.0, gamma=3.0, smooth=1.0, binary_targets=True))
    ref = focal_dice_loss_ref(x, t, alpha=1.0, gamma=3.0, smooth=1.0)
    assert jnp.allclose(out, ref, rtol=1e-4, atol=1e-5), (out, ref)

    print("KERNEL_OK")
</pallas_src>

<mosaic_0001>
module attributes {stable_mosaic.version = 11 : i64} {
  func.func @_focal_dice_partial_kernel(%arg0: i32, %arg1: memref<64x128xf32, #tpu.memory_space<vmem>>, %arg2: memref<64x128xf32, #tpu.memory_space<vmem>>, %arg3: memref<1x32x128xf32, #tpu.memory_space<vmem>>) attributes {dimension_semantics = [#tpu.dimension_semantics<parallel>], iteration_bounds = array<i64: 1>, scalar_prefetch = 0 : i64, scratch_operands = 0 : i64, tpu.core_type = #tpu.core_type<tc>, window_params = [{transform_indices = @transform_0, window_bounds = array<i64: 64, 128>}, {transform_indices = @transform_1, window_bounds = array<i64: 64, 128>}, {transform_indices = @transform_2, window_bounds = array<i64: 1, 32, 128>}]} {
    %cst = arith.constant 0.000000e+00 : f32
    %0 = vector.broadcast %cst : f32 to vector<8x128xf32>
    %c0_i32 = arith.constant 0 : i32
    %c64_i32 = arith.constant 64 : i32
    %1 = arith.muli %c0_i32, %c64_i32 : i32
    %2 = tpu.assume_multiple %1, 64 : i32
    %3 = arith.index_cast %2 : i32 to index
    %c0 = arith.constant 0 : index
    %4 = vector.load %arg1[%3, %c0] : memref<64x128xf32, #tpu.memory_space<vmem>>, vector<64x128xf32>
    %5 = arith.index_cast %2 : i32 to index
    %c0_0 = arith.constant 0 : index
    %6 = vector.load %arg2[%5, %c0_0] : memref<64x128xf32, #tpu.memory_space<vmem>>, vector<64x128xf32>
    %7 = math.absf %4 : vector<64x128xf32>
    %cst_1 = arith.constant 0.000000e+00 : f32
    %8 = vector.broadcast %cst_1 : f32 to vector<64x128xf32>
    %9 = arith.subf %8, %7 : vector<64x128xf32>
    %10 = math.exp %9 : vector<64x128xf32>
    %cst_2 = arith.constant 1.000000e+00 : f32
    %11 = vector.broadcast %cst_2 : f32 to vector<64x128xf32>
    %12 = arith.addf %11, %10 : vector<64x128xf32>
    %13 = arith.mulf %4, %6 : vector<64x128xf32>
    %14 = arith.subf %4, %13 : vector<64x128xf32>
    %cst_3 = arith.constant 0.000000e+00 : f32
    %15 = vector.broadcast %cst_3 : f32 to vector<64x128xf32>
    %16 = arith.subf %15, %4 : vector<64x128xf32>
    %cst_4 = arith.constant 0.000000e+00 : f32
    %17 = vector.broadcast %cst_4 : f32 to vector<64x128xf32>
    %18 = arith.maximumf %16, %17 : vector<64x128xf32>
    %19 = arith.addf %14, %18 : vector<64x128xf32>
    %20 = math.log %12 : vector<64x128xf32>
    %21 = arith.addf %19, %20 : vector<64x128xf32>
    %cst_5 = arith.constant 0.000000e+00 : f32
    %22 = vector.broadcast %cst_5 : f32 to vector<64x128xf32>
    %23 = arith.cmpf oge, %4, %22 : vector<64x128xf32>
    %cst_6 = arith.constant 1.000000e+00 : f32
    %24 = vector.broadcast %cst_6 : f32 to vector<64x128xf32>
    %25 = arith.select %23, %24, %10 : vector<64x128xi1>, vector<64x128xf32>
    %26 = tpu.reciprocal %12 : vector<64x128xf32> -> vector<64x128xf32>
    %27 = arith.mulf %25, %26 : vector<64x128xf32>
    %28 = arith.addf %27, %6 : vector<64x128xf32>
    %cst_7 = arith.constant 2.000000e+00 : f32
    %29 = vector.broadcast %cst_7 : f32 to vector<64x128xf32>
    %30 = arith.mulf %29, %27 : vector<64x128xf32>
    %31 = arith.mulf %30, %6 : vector<64x128xf32>
    %32 = arith.subf %28, %31 : vector<64x128xf32>
    %33 = arith.mulf %32, %32 : vector<64x128xf32>
    %34 = arith.mulf %33, %21 : vector<64x128xf32>
    %35 = tpu.iota {dimensions = array<i32: 0>} : vector<64x128xi32>
    %36 = tpu.iota {dimensions = array<i32: 1>} : vector<64x128xi32>
    %c64_i32_8 = arith.constant 64 : i32
    %37 = arith.muli %c0_i32, %c64_i32_8 : i32
    %c0_i32_9 = arith.constant 0 : i32
    %38 = arith.addi %c0_i32_9, %37 : i32
    %39 = vector.broadcast %38 : i32 to vector<64x128xi32>
    %40 = arith.addi %39, %35 : vector<64x128xi32>
    %c128_i32 = arith.constant 128 : i32
    %41 = vector.broadcast %c128_i32 : i32 to vector<64x128xi32>
    %42 = arith.muli %40, %41 : vector<64x128xi32>
    %43 = arith.addi %42, %36 : vector<64x128xi32>
    %c2048_i32 = arith.constant 2048 : i32
    %44 = vector.broadcast %c2048_i32 : i32 to vector<64x128xi32>
    %45 = arith.cmpi slt, %43, %44 : vector<64x128xi32>
    %cst_10 = arith.constant 0.000000e+00 : f32
    %46 = vector.broadcast %cst_10 : f32 to vector<64x128xf32>
    %47 = arith.select %45, %34, %46 : vector<64x128xi1>, vector<64x128xf32>
    %48 = arith.select %45, %27, %46 : vector<64x128xi1>, vector<64x128xf32>
    %49 = arith.select %45, %6, %46 : vector<64x128xi1>, vector<64x128xf32>
    %50 = vector.shape_cast %47 : vector<64x128xf32> to vector<8x8x128xf32>
    %cst_11 = arith.constant dense<0.000000e+00> : vector<8x128xf32>
    %51 = vector.multi_reduction <add>, %50, %cst_11 [0] : vector<8x8x128xf32> to vector<8x128xf32>
    %52 = arith.addf %0, %51 : vector<8x128xf32>
    %53 = arith.mulf %48, %49 : vector<64x128xf32>
    %54 = vector.shape_cast %53 : vector<64x128xf32> to vector<8x8x128xf32>
    %cst_12 = arith.constant dense<0.000000e+00> : vector<8x128xf32>
    %55 = vector.multi_reduction <add>, %54, %cst_12 [0] : vector<8x8x128xf32> to vector<8x128xf32>
    %56 = arith.addf %0, %55 : vector<8x128xf32>
    %57 = vector.shape_cast %48 : vector<64x128xf32> to vector<8x8x128xf32>
    %cst_13 = arith.constant dense<0.000000e+00> : vector<8x128xf32>
    %58 = vector.multi_reduction <add>, %57, %cst_13 [0] : vector<8x8x128xf32> to vector<8x128xf32>
    %59 = arith.addf %0, %58 : vector<8x128xf32>
    %60 = vector.shape_cast %49 : vector<64x128xf32> to vector<8x8x128xf32>
    %cst_14 = arith.constant dense<0.000000e+00> : vector<8x128xf32>
    %61 = vector.multi_reduction <add>, %60, %cst_14 [0] : vector<8x8x128xf32> to vector<8x128xf32>
    %62 = arith.addf %0, %61 : vector<8x128xf32>
    %c1_i32 = arith.constant 1 : i32
    %c0_15 = arith.constant 0 : index
    %c0_16 = arith.constant 0 : index
    %c0_17 = arith.constant 0 : index
    %63 = vector.load %arg3[%c0_15, %c0_16, %c0_17] : memref<1x32x128xf32, #tpu.memory_space<vmem>>, vector<1x8x128xf32>
    %64 = vector.shape_cast %63 : vector<1x8x128xf32> to vector<8x128xf32>
    %65 = vector.shape_cast %52 : vector<8x128xf32> to vector<1x8x128xf32>
    tpu.vector_store %arg3[%c0_15, %c0_16, %c0_17], %65 {strides = array<i32>} : memref<1x32x128xf32, #tpu.memory_space<vmem>>, vector<1x8x128xf32>,
    %c0_18 = arith.constant 0 : index
    %c8 = arith.constant 8 : index
    %c0_19 = arith.constant 0 : index
    %66 = vector.load %arg3[%c0_18, %c8, %c0_19] : memref<1x32x128xf32, #tpu.memory_space<vmem>>, vector<1x8x128xf32>
    %67 = vector.shape_cast %66 : vector<1x8x128xf32> to vector<8x128xf32>
    %68 = vector.shape_cast %56 : vector<8x128xf32> to vector<1x8x128xf32>
    tpu.vector_store %arg3[%c0_18, %c8, %c0_19], %68 {strides = array<i32>} : memref<1x32x128xf32, #tpu.memory_space<vmem>>, vector<1x8x128xf32>,
    %c0_20 = arith.constant 0 : index
    %c16 = arith.constant 16 : index
    %c0_21 = arith.constant 0 : index
    %69 = vector.load %arg3[%c0_20, %c16, %c0_21] : memref<1x32x128xf32, #tpu.memory_space<vmem>>, vector<1x8x128xf32>
    %70 = vector.shape_cast %69 : vector<1x8x128xf32> to vector<8x128xf32>
    %71 = vector.shape_cast %59 : vector<8x128xf32> to vector<1x8x128xf32>
    tpu.vector_store %arg3[%c0_20, %c16, %c0_21], %71 {strides = array<i32>} : memref<1x32x128xf32, #tpu.memory_space<vmem>>, vector<1x8x128xf32>,
    %c0_22 = arith.constant 0 : index
    %c24 = arith.constant 24 : index
    %c0_23 = arith.constant 0 : index
    %72 = vector.load %arg3[%c0_22, %c24, %c0_23] : memref<1x32x128xf32, #tpu.memory_space<vmem>>, vector<1x8x128xf32>
    %73 = vector.shape_cast %72 : vector<1x8x128xf32> to vector<8x128xf32>
    %74 = vector.shape_cast %62 : vector<8x128xf32> to vector<1x8x128xf32>
    tpu.vector_store %arg3[%c0_22, %c24, %c0_23], %74 {strides = array<i32>} : memref<1x32x128xf32, #tpu.memory_space<vmem>>, vector<1x8x128xf32>,
    return
  }
  func.func @transform_0(%arg0: i32) -> (i32, i32) {
    %c0_i32 = arith.constant 0 : i32
    %c0_i32_0 = arith.constant 0 : i32
    return %arg0, %c0_i32 : i32, i32
  }
  func.func @transform_1(%arg0: i32) -> (i32, i32) {
    %c0_i32 = arith.constant 0 : i32
    %c0_i32_0 = arith.constant 0 : i32
    return %arg0, %c0_i32 : i32, i32
  }
  func.func @transform_2(%arg0: i32) -> (i32, i32, i32) {
    %c0_i32 = arith.constant 0 : i32
    %c0_i32_0 = arith.constant 0 : i32
    %c0_i32_1 = arith.constant 0 : i32
    return %arg0, %c0_i32, %c0_i32_0 : i32, i32, i32
  }
}

</mosaic_0001>

<bundles_post_ra>
// kernel: tpu_custom_call.1
= control target key start
LH: loop header
LB: loop body
LE: loop exit
PB: predicated region body
PF: predicated region fallthrough
CT: control target
= control target key end

     0   :  { %7 = vsyncpa [#allocation3], 0  ;;  %s849_s0 = inlined_call_operand.hbm [shape: f32[16,128], index: 0, kind: input, shape index: {}]   ;;  %s850_s1 = inlined_call_operand.hbm [shape: f32[16,128], index: 1, kind: input, shape index: {}]   ;;  %s851_s2 = inlined_call_operand.hbm [shape: f32[1,32,128], index: 2, kind: output, shape index: {}]  }
   0x1   :  { %8 = vsyncpa [#allocation6], 0 }
   0x2   :  { %9 = vsyncpa [#allocation4], 0 }
   0x3   :  { %14 = vsyncadd [#allocation3], 768  ;;  %s486_s9 = smov [#allocation2]   ;;  %s414_s13 = scalar_lea.hbm %s849_s0, 256 }
   0x4   :  { %s15_s10 = sshll.u32 %s486_s9, 4  ;;  %p415_p0 = scmp.ne.s32.totalorder %s849_s0, %s414_s13  ;;  %s16_s10 = int_to_ptr.vmem [resolvable:$true] %s15_s10 }
   0x5   :  { %p418_p1 = scmp.lt.u32.totalorder %s414_s13, %s849_s0 }
   0x7   :  { %p420_p2 = pnand %p418_p1, %p415_p0 }
   0x9   :  { %423 = shalt.err (!%p420_p2)
}
   0xa   :  { %s424_s18 = scalar_lea.vmem %s16_s10, 256  ;;  %s428_s19 = scalar_lea.vmem %s16_s10, 1024 }
   0xb   :  { %p425_p3 = scmp.ne.s32.totalorder %s16_s10, %s424_s18  ;;  %p429_p4 = scmp.lt.s32.totalorder %s16_s10, %s16_s10 }
   0xc   :  { %p430_p5 = scmp.lt.s32.totalorder %s428_s19, %s424_s18 }
   0xe   :  { %p431_p6 = por %p430_p5, %p429_p4 }
  0x10   :  { %p432_p7 = pnand %p431_p6, %p425_p3 }
  0x12   :  { %435 = shalt.err (!%p432_p7)
}
  0x13   :  { %s487_s20 = smov 128   ;;  %s488_s21 = smov 8  }
  0x14   :  { %21 = dma.hbm_to_vmem [thread:$0]  %s849_s0, 256, %s16_s10, [#allocation3], %s487_s20, %s487_s20, %s488_s21  }
  0x15   :  { %26 = vsyncadd [#allocation6], 768  ;;  %s489_s24 = smov [#allocation5]   ;;  %s436_s28 = scalar_lea.hbm %s850_s1, 256 }
  0x16   :  { %s27_s25 = sshll.u32 %s489_s24, 4  ;;  %p437_p8 = scmp.ne.s32.totalorder %s850_s1, %s436_s28  ;;  %s28_s25 = int_to_ptr.vmem [resolvable:$true] %s27_s25 }
  0x17   :  { %p440_p9 = scmp.lt.u32.totalorder %s436_s28, %s850_s1 }
  0x19   :  { %p442_p10 = pnand %p440_p9, %p437_p8 }
  0x1b   :  { %445 = shalt.err (!%p442_p10)
}
  0x1c   :  { %s446_s5 = scalar_lea.vmem %s28_s25, 256  ;;  %s450_s0 = scalar_lea.vmem %s28_s25, 1024 }
  0x1d   :  { %p447_p11 = scmp.ne.s32.totalorder %s28_s25, %s446_s5  ;;  %p451_p12 = scmp.lt.s32.totalorder %s28_s25, %s28_s25 }
  0x1e   :  { %p452_p13 = scmp.lt.s32.totalorder %s450_s0, %s446_s5 }
  0x20   :  { %p453_p0 = por %p452_p13, %p451_p12 }
  0x22   :  { %p454_p1 = pnand %p453_p0, %p447_p11 }
  0x24   :  { %457 = shalt.err (!%p454_p1)
}
  0x25   :  { %33 = dma.hbm_to_vmem [thread:$0]  %s850_s1, 256, %s28_s25, [#allocation6], %s487_s20, %s487_s20, %s488_s21  }
  0x26   :  { %480 = dma.done.wait [#allocation3], 1024  }
  0x27   :  { %481 = vsyncadd [#allocation3], 4294966272 }
  0x28   :  { %482 = dma.done.wait [#allocation6], 1024  }
  0x29   :  { %483 = vsyncadd [#allocation6], 4294966272  ;;  %v240_v0 = vlaneseq  ;;  %v536_v1 = vld [vmem:[#allocation2] sm:$0xff]  ;;  %v538_v2 = vld [vmem:[#allocation2 + $0x8] sm:$0xff]  ;;  %s490_s1 = smov [#allocation7]  }
  0x2a   :  { %v540_v3 = vld [vmem:[#allocation2 + $0x10] sm:$0xff]  ;;  %v542_v5 = vld [vmem:[#allocation2 + $0x18] sm:$0xff]  ;;  %v56_v6 = vand.u32 2147483647, %v536_v1  ;;  %v545_v7 = vld [vmem:[#allocation2 + $0x20] sm:$0xff]  ;;  %v112_v61 = vsub.f32 0.0, %v536_v1 }
  0x2b   :  { %v241_v4 = vshrl.u32 %v240_v0, 7  ;;  %v547_v8 = vld [vmem:[#allocation2 + $0x28] sm:$0xff]  ;;  %v57_v9 = vand.u32 2147483647, %v538_v2  ;;  %v550_v10 = vld [vmem:[#allocation2 + $0x30] sm:$0xff]  ;;  %v552_v11 = vld [vmem:[#allocation2 + $0x38] sm:$0xff] }
  0x2c   :  { %v58_v12 = vand.u32 2147483647, %v540_v3  ;;  %v64_v13 = vsub.f32 0.0, %v56_v6  ;;  %v59_v14 = vand.u32 2147483647, %v542_v5  ;;  %v556_v17 = vand.u32 127, %v240_v0 }
  0x2d   :  { %v65_v15 = vsub.f32 0.0, %v57_v9  ;;  %v242_v16 = vadd.s32 8, %v241_v4  ;;  %v60_v18 = vand.u32 2147483647, %v545_v7  ;;  %v61_v19 = vand.u32 2147483647, %v547_v8 }
  0x2e   :  { %v66_v20 = vsub.f32 0.0, %v58_v12  ;;  %v243_v21 = vadd.s32 16, %v241_v4  ;;  %v62_v22 = vand.u32 2147483647, %v550_v10  ;;  %v63_v23 = vand.u32 2147483647, %v552_v11 }
  0x2f   :  { %v67_v24 = vsub.f32 0.0, %v59_v14  ;;  %v244_v25 = vadd.s32 24, %v241_v4  ;;  %v68_v26 = vsub.f32 0.0, %v60_v18  ;;  %v69_v27 = vsub.f32 0.0, %v61_v19  ;;  %v566_v40 = vld [vmem:[#allocation5] sm:$0xff]  ;;  %v568_v41 = vld [vmem:[#allocation5 + $0x8] sm:$0xff] }
  0x30   :  { %v72_v28 = vmul.f32 1.442695, %v64_v13  ;;  %v74_v29 = vmul.f32 1.442695, %v65_v15  ;;  %v70_v30 = vsub.f32 0.0, %v62_v22  ;;  %v71_v31 = vsub.f32 0.0, %v63_v23 }
  0x31   :  { %v76_v32 = vmul.f32 1.442695, %v66_v20  ;;  %v78_v33 = vmul.f32 1.442695, %v67_v24  ;;  %v80_v34 = vmul.f32 1.442695, %v68_v26  ;;  %v96_v55 = vmul.f32 %v566_v40, %v536_v1 }
  0x32   :  { %366 = vpow2.f32 %v72_v28  ;;  %v245_v35 = vadd.s32 32, %v241_v4  ;;  %v251_v36 = vmul.u32 128, %v241_v4  ;;  %v82_v37 = vmul.f32 1.442695, %v69_v27  ;;  %v570_v42 = vld [vmem:[#allocation5 + $0x10] sm:$0xff]  ;;  %v574_v45 = vld [vmem:[#allocation5 + $0x18] sm:$0xff] }
  0x33   :  { %368 = vpow2.f32 %v74_v29  ;;  %v562_v38 = vadd.s32 40, %v241_v4  ;;  %v564_v39 = vadd.s32 48, %v241_v4  ;;  %v84_v43 = vmul.f32 1.442695, %v70_v30  ;;  %v576_v46 = vld [vmem:[#allocation5 + $0x20] sm:$0xff]  ;;  %v578_v50 = vld [vmem:[#allocation5 + $0x28] sm:$0xff] }
  0x34   :  { %370 = vpow2.f32 %v76_v32  ;;  %v572_v44 = vadd.s32 56, %v241_v4  ;;  %v86_v47 = vmul.f32 1.442695, %v71_v31  ;;  %v252_v48 = vmul.u32 128, %v242_v16  ;;  %v583_v54 = vld [vmem:[#allocation5 + $0x30] sm:$0xff]  ;;  %v591_v58 = vld [vmem:[#allocation5 + $0x38] sm:$0xff] }
  0x35   :  { %372 = vpow2.f32 %v78_v33  ;;  %v253_v49 = vmul.u32 128, %v243_v21  ;;  %v254_v51 = vmul.u32 128, %v244_v25  ;;  %v581_v53 = vadd.s32 %v251_v36, %v556_v17  ;;  %857 = vst [vmem:[#allocation11_spill] sm:$0xff] %v591_v58  ;;  %s348_s8 = sshll.u32 %s490_s1, 4  ;;  %s349_s8 = int_to_ptr.vmem [resolvable:$true] %s348_s8 }
  0x36   :  { %374 = vpow2.f32 %v80_v34  ;;  %v255_v52 = vmul.u32 128, %v245_v35  ;;  %v97_v56 = vmul.f32 %v568_v41, %v538_v2  ;;  %v98_v57 = vmul.f32 %v570_v42, %v540_v3  ;;  %s458_s9 = scalar_lea.vmem %s349_s8, 512  ;;  %p463_p3 = scmp.lt.s32.totalorder %s349_s8, %s349_s8 }
  0x37   :  { %376 = vpow2.f32 %v82_v37  ;;  %v99_v59 = vmul.f32 %v574_v45, %v542_v5  ;;  %v100_v60 = vmul.f32 %v576_v46, %v545_v7  ;;  %v101_v62 = vmul.f32 %v578_v50, %v547_v8  ;;  %p459_p2 = scmp.ne.s32.totalorder %s349_s8, %s458_s9  ;;  %p464_p4 = scmp.lt.s32.totalorder %s458_s9, %s458_s9 }
  0x38   :  { %378 = vpow2.f32 %v84_v43  ;;  %v601_v63 = vadd.s32 %v252_v48, %v556_v17  ;;  %v604_v0 = vadd.s32 %v253_v49, %v556_v17  ;;  %v102_v4 = vmul.f32 %v583_v54, %v550_v10 }
  0x39   :  { %380 = vpow2.f32 %v86_v47  ;;  %v113_v6 = vsub.f32 0.0, %v538_v2  ;;  %v610_v9 = vadd.s32 %v254_v51, %v556_v17  ;;  %v613_v12 = vadd.s32 %v255_v52, %v556_v17  ;;  %p465_p5 = por %p464_p4, %p463_p3 }
  0x3a   :  { %v103_v13 = vmul.f32 %v591_v58, %v552_v11  ;;  %v104_v14 = vsub.f32 %v536_v1, %v96_v55  ;;  %v105_v15 = vsub.f32 %v538_v2, %v97_v56  ;;  %v106_v16 = vsub.f32 %v540_v3, %v98_v57 }
  0x3b   :  { %858 = vst [vmem:[#allocation12_spill] sm:$0xff] %v613_v12  ;;  %v107_v19 = vsub.f32 %v542_v5, %v99_v59  ;;  %v108_v20 = vsub.f32 %v545_v7, %v100_v60  ;;  %v114_v21 = vsub.f32 0.0, %v540_v3  ;;  %v115_v22 = vsub.f32 0.0, %v542_v5  ;;  %p466_p6 = pnand %p465_p5, %p459_p2 }
  0x3c   :  { %v367_v18 = vpop.eup %366  ;;  %v109_v25 = vsub.f32 %v547_v8, %v101_v62  ;;  %v116_v26 = vsub.f32 0.0, %v545_v7  ;;  %v117_v27 = vsub.f32 0.0, %v547_v8  ;;  %v110_v30 = vsub.f32 %v550_v10, %v102_v4 }
  0x3d   :  { %v369_v23 = vpop.eup %368  ;;  %v88_v24 = vadd.f32 1.0, %v367_v18  ;;  %v118_v31 = vsub.f32 0.0, %v550_v10  ;;  %v119_v32 = vsub.f32 0.0, %v552_v11  ;;  %v120_v35 = vmax.f32 %v112_v61, 0.0 }
  0x3e   :  { %v371_v28 = vpop.eup %370  ;;  %v89_v29 = vadd.f32 1.0, %v369_v23  ;;  %v121_v36 = vmax.f32 %v113_v6, 0.0  ;;  %v122_v47 = vmax.f32 %v114_v21, 0.0  ;;  %v123_v48 = vmax.f32 %v115_v22, 0.0 }
  0x3f   :  { %v373_v33 = vpop.eup %372  ;;  %v90_v34 = vadd.f32 1.0, %v371_v28  ;;  %382 = vlog2.f32 %v88_v24  ;;  %v124_v52 = vmax.f32 %v116_v26, 0.0  ;;  %v125_v55 = vmax.f32 %v117_v27, 0.0 }
  0x40   :  { %v375_v37 = vpop.eup %374  ;;  %v91_v43 = vadd.f32 1.0, %v373_v33  ;;  %384 = vlog2.f32 %v89_v29  ;;  %v111_v59 = vsub.f32 %v552_v11, %v103_v13  ;;  %v126_v60 = vmax.f32 %v118_v31, 0.0 }
  0x41   :  { %v377_v49 = vpop.eup %376  ;;  %v92_v51 = vadd.f32 1.0, %v375_v37  ;;  %386 = vlog2.f32 %v90_v34  ;;  %v127_v4 = vmax.f32 %v119_v32, 0.0  ;;  %v631_v6 = vadd.f32 %v120_v35, %v104_v14 }
  0x42   :  { %v379_v56 = vpop.eup %378  ;;  %v93_v57 = vadd.f32 1.0, %v377_v49  ;;  %388 = vlog2.f32 %v91_v43  ;;  %v633_v22 = vadd.f32 %v121_v36, %v105_v15  ;;  %v635_v58 = vadd.f32 %v122_v47, %v106_v16 }
  0x43   :  { %v381_v62 = vpop.eup %380  ;;  %v94_v61 = vadd.f32 1.0, %v379_v56  ;;  %390 = vlog2.f32 %v92_v51  ;;  %v637_v26 = vadd.f32 %v123_v48, %v107_v19  ;;  %v639_v27 = vadd.f32 %v124_v52, %v108_v20 }
  0x44   :  { %v95_v21 = vadd.f32 1.0, %v381_v62  ;;  %392 = vlog2.f32 %v93_v57  ;;  %v641_v12 = vadd.f32 %v125_v55, %v109_v25  ;;  %v643_v13 = vadd.f32 %v126_v60, %v110_v30 }
  0x45   :  { %394 = vlog2.f32 %v94_v61  ;;  %vm160_vm0 = vcmp.ge.f32.partialorder %v536_v1, 0.0  ;;  %vm161_vm1 = vcmp.ge.f32.partialorder %v538_v2, 0.0  ;;  %vm162_vm2 = vcmp.ge.f32.partialorder %v540_v3, 0.0 }
  0x46   :  { %396 = vlog2.f32 %v95_v21  ;;  %vm163_vm3 = vcmp.ge.f32.partialorder %v542_v5, 0.0  ;;  %vm164_vm4 = vcmp.ge.f32.partialorder %v545_v7, 0.0  ;;  %v650_v14 = vadd.f32 %v127_v4, %v111_v59 }
  0x47   :  { %398 = vrcp.f32 %v88_v24  ;;  %vm165_vm5 = vcmp.ge.f32.partialorder %v547_v8, 0.0  ;;  %vm166_vm6 = vcmp.ge.f32.partialorder %v550_v10, 0.0  ;;  %vm167_vm7 = vcmp.ge.f32.partialorder %v552_v11, 0.0 }
  0x48   :  { %400 = vrcp.f32 %v89_v29  ;;  %v168_v1 = vsel %vm160_vm0, 1.0, %v367_v18  ;;  %v169_v16 = vsel %vm161_vm1, 1.0, %v369_v23  ;;  %v170_v3 = vsel %vm162_vm2, 1.0, %v371_v28 }
  0x49   :  { %v383_v15 = vpop.eup %382  ;;  %402 = vrcp.f32 %v90_v34  ;;  %v171_v19 = vsel %vm163_vm3, 1.0, %v373_v33  ;;  %v172_v5 = vsel %vm164_vm4, 1.0, %v375_v37  ;;  %v173_v20 = vsel %vm165_vm5, 1.0, %v377_v49 }
  0x4a   :  { %v385_v2 = vpop.eup %384  ;;  %404 = vrcp.f32 %v91_v43  ;;  %v655_v24 = vsel %vm166_vm6, 1.0, %v379_v56  ;;  %v256_v8 = vmul.u32 128, %v562_v38  ;;  %v257_v25 = vmul.u32 128, %v564_v39 }
  0x4b   :  { %v387_v7 = vpop.eup %386  ;;  %406 = vrcp.f32 %v92_v51  ;;  %v258_v18 = vmul.u32 128, %v572_v44  ;;  %vm267_vm8 = vcmp.lt.s32.totalorder %v581_v53, 2048  ;;  %v137_v28 = vmul.f32 0.6931472, %v383_v15 }
  0x4c   :  { %v389_v10 = vpop.eup %388  ;;  %408 = vrcp.f32 %v93_v57  ;;  %vm268_vm9 = vcmp.lt.s32.totalorder %v601_v63, 2048  ;;  %vm269_vm10 = vcmp.lt.s32.totalorder %v604_v0, 2048  ;;  %v139_v30 = vmul.f32 0.6931472, %v385_v2 }
  0x4d   :  { %v391_v23 = vpop.eup %390  ;;  %410 = vrcp.f32 %v94_v61  ;;  %v141_v31 = vmul.f32 0.6931472, %v387_v7  ;;  %vm270_vm11 = vcmp.lt.s32.totalorder %v610_v9, 2048  ;;  %v143_v32 = vmul.f32 0.6931472, %v389_v10 }
  0x4e   :  { %v393_v29 = vpop.eup %392  ;;  %412 = vrcp.f32 %v95_v21  ;;  %v145_v39 = vmul.f32 0.6931472, %v391_v23  ;;  %v175_v44 = vsel %vm167_vm7, 1.0, %v381_v62  ;;  %v667_v33 = vadd.s32 %v256_v8, %v556_v17 }
  0x4f   :  { %v395_v38 = vpop.eup %394  ;;  %v147_v35 = vmul.f32 0.6931472, %v393_v29  ;;  %v670_v36 = vadd.s32 %v257_v25, %v556_v17  ;;  %v673_v37 = vadd.s32 %v258_v18, %v556_v17  ;;  %v678_v43 = vsel %vm267_vm8, %v566_v40, 0.0 }
  0x50   :  { %v397_v34 = vpop.eup %396  ;;  %v681_v11 = vadd.f32 %v137_v28, %v631_v6  ;;  %v686_v48 = vsel %vm268_vm9, %v568_v41, 0.0  ;;  %v691_v49 = vsel %vm269_vm10, %v570_v42, 0.0  ;;  %v696_v17 = vsel %vm270_vm11, %v574_v45, 0.0 }
  0x51   :  { %v399_v47 = vpop.eup %398  ;;  %v699_v52 = vadd.f32 %v139_v30, %v633_v22  ;;  %v702_v55 = vadd.f32 %v141_v31, %v635_v58  ;;  %v708_v57 = vadd.f32 %v686_v48, %v678_v43  ;;  %v149_v60 = vmul.f32 0.6931472, %v395_v38 }
  0x52   :  { %v401_v51 = vpop.eup %400  ;;  %v704_v56 = vmul.f32 %v399_v47, %v168_v1  ;;  %v155_v62 = vadd.f32 %v143_v32, %v637_v26  ;;  %v712_v61 = vadd.f32 %v145_v39, %v639_v27  ;;  %v151_v21 = vmul.f32 0.6931472, %v397_v34  ;;  %v861_v47 = vld [vmem:[#allocation12_spill] sm:$0xff] }
  0x53   :  { %v403_v59 = vpop.eup %402  ;;  %v714_v4 = vmul.f32 %v401_v51, %v169_v16  ;;  %v717_v58 = vadd.f32 %v147_v35, %v641_v12  ;;  %vm271_vm12 = vcmp.lt.s32.totalorder %v861_v47, 2048  ;;  %vm272_vm13 = vcmp.lt.s32.totalorder %v667_v33, 2048 }
  0x54   :  { %v405_v6 = vpop.eup %404  ;;  %v719_v22 = vmul.f32 %v403_v59, %v170_v3  ;;  %v200_v15 = vmul.f32 2.0, %v704_v56  ;;  %v192_v26 = vadd.f32 %v704_v56, %v566_v40  ;;  %vm273_vm14 = vcmp.lt.s32.totalorder %v670_v36, 2048 }
  0x55   :  { %v407_v1 = vpop.eup %406  ;;  %v722_v2 = vmul.f32 %v405_v6, %v171_v19  ;;  %v193_v27 = vadd.f32 %v714_v4, %v568_v41  ;;  %v201_v16 = vmul.f32 2.0, %v714_v4  ;;  %vm274_vm15 = vcmp.lt.s32.totalorder %v673_v37, 2048 }
  0x56   :  { %v409_v7 = vpop.eup %408  ;;  %v729_v8 = vmul.f32 %v407_v1, %v172_v5  ;;  %v194_v12 = vadd.f32 %v719_v22, %v570_v42  ;;  %v202_v3 = vmul.f32 2.0, %v719_v22  ;;  %v208_v10 = vmul.f32 %v200_v15, %v566_v40 }
  0x57   :  { %v411_v19 = vpop.eup %410  ;;  %v735_v25 = vmul.f32 %v409_v7, %v173_v20  ;;  %v195_v18 = vadd.f32 %v722_v2, %v574_v45  ;;  %v203_v23 = vmul.f32 2.0, %v722_v2  ;;  %v209_v28 = vmul.f32 %v201_v16, %v568_v41 }
  0x58   :  { %v413_v29 = vpop.eup %412  ;;  %v742_v5 = vmul.f32 %v411_v19, %v655_v24  ;;  %v196_v30 = vadd.f32 %v729_v8, %v576_v46  ;;  %v204_v31 = vmul.f32 2.0, %v729_v8  ;;  %v210_v40 = vmul.f32 %v202_v3, %v570_v42  ;;  %v862_v42 = vld [vmem:[#allocation11_spill] sm:$0xff] }
  0x59   :  { %v748_v20 = vmul.f32 %v413_v29, %v175_v44  ;;  %v197_v38 = vadd.f32 %v735_v25, %v578_v50  ;;  %v205_v32 = vmul.f32 2.0, %v735_v25  ;;  %v211_v41 = vmul.f32 %v203_v23, %v574_v45 }
  0x5a   :  { %859 = vst [vmem:[#allocation13_spill] sm:$0xff] %v742_v5  ;;  %v198_v24 = vadd.f32 %v742_v5, %v583_v54  ;;  %v206_v39 = vmul.f32 2.0, %v742_v5  ;;  %v212_v34 = vmul.f32 %v204_v31, %v576_v46  ;;  %v216_v35 = vsub.f32 %v192_v26, %v208_v10 }
  0x5b   :  { %860 = vst [vmem:[#allocation14_spill] sm:$0xff] %v748_v20  ;;  %v199_v44 = vadd.f32 %v748_v20, %v862_v42  ;;  %v207_v51 = vmul.f32 2.0, %v748_v20  ;;  %v213_v59 = vmul.f32 %v205_v32, %v578_v50  ;;  %v217_v6 = vsub.f32 %v193_v27, %v209_v28 }
  0x5c   :  { %v214_v45 = vmul.f32 %v206_v39, %v583_v54  ;;  %v218_v15 = vsub.f32 %v194_v12, %v210_v40  ;;  %v219_v1 = vsub.f32 %v195_v18, %v211_v41  ;;  %v220_v16 = vsub.f32 %v196_v30, %v212_v34 }
  0x5d   :  { %v215_v7 = vmul.f32 %v207_v51, %v862_v42  ;;  %v221_v3 = vsub.f32 %v197_v38, %v213_v59  ;;  %v224_v19 = vmul.f32 %v216_v35, %v216_v35  ;;  %v225_v26 = vmul.f32 %v217_v6, %v217_v6 }
  0x5e   :  { %v222_v10 = vsub.f32 %v198_v24, %v214_v45  ;;  %v226_v23 = vmul.f32 %v218_v15, %v218_v15  ;;  %v227_v29 = vmul.f32 %v219_v1, %v219_v1  ;;  %v228_v31 = vmul.f32 %v220_v16, %v220_v16 }
  0x5f   :  { %v223_v20 = vsub.f32 %v199_v44, %v215_v7  ;;  %v229_v5 = vmul.f32 %v221_v3, %v221_v3  ;;  %v232_v27 = vmul.f32 %v224_v19, %v681_v11  ;;  %v233_v28 = vmul.f32 %v225_v26, %v699_v52 }
  0x60   :  { %v158_v12 = vadd.f32 %v149_v60, %v643_v13  ;;  %v234_v18 = vmul.f32 %v226_v23, %v702_v55  ;;  %v235_v30 = vmul.f32 %v227_v29, %v155_v62  ;;  %v332_v40 = vadd.f32 %v708_v57, %v691_v49 }
  0x61   :  { %v159_v38 = vadd.f32 %v151_v21, %v650_v14  ;;  %v230_v32 = vmul.f32 %v222_v10, %v222_v10  ;;  %v275_v41 = vsel %vm267_vm8, %v232_v27, 0.0  ;;  %v276_v24 = vsel %vm268_vm9, %v233_v28, 0.0  ;;  %v863_v15 = vld [vmem:[#allocation13_spill] sm:$0xff] }
  0x62   :  { %v236_v11 = vmul.f32 %v228_v31, %v712_v61  ;;  %v277_v13 = vsel %vm269_vm10, %v234_v18, 0.0  ;;  %v283_v52 = vsel %vm267_vm8, %v704_v56, 0.0  ;;  %v284_v14 = vsel %vm268_vm9, %v714_v4, 0.0  ;;  %v864_v19 = vld [vmem:[#allocation14_spill] sm:$0xff] }
  0x63   :  { %v231_v55 = vmul.f32 %v223_v20, %v223_v20  ;;  %v237_v57 = vmul.f32 %v229_v5, %v717_v58  ;;  %v299_v60 = vadd.f32 %v276_v24, %v275_v41  ;;  %v285_v62 = vsel %vm269_vm10, %v719_v22, 0.0 }
  0x64   :  { %v278_v53 = vsel %vm270_vm11, %v235_v30, 0.0  ;;  %v333_v56 = vadd.f32 %v332_v40, %v696_v17  ;;  %v238_v61 = vmul.f32 %v230_v32, %v158_v12  ;;  %v286_v4 = vsel %vm270_vm11, %v722_v2, 0.0 }
  0x65   :  { %v300_v63 = vadd.f32 %v299_v60, %v277_v13  ;;  %v295_v0 = vsel %vm271_vm12, %v576_v46, 0.0  ;;  %v279_v21 = vsel %vm271_vm12, %v236_v11, 0.0  ;;  %v307_v58 = vmul.f32 %v678_v43, %v283_v52 }
  0x66   :  { %v308_v22 = vmul.f32 %v686_v48, %v284_v14  ;;  %v309_v5 = vmul.f32 %v691_v49, %v285_v62  ;;  %v239_v20 = vmul.f32 %v231_v55, %v159_v38  ;;  %v280_v39 = vsel %vm272_vm13, %v237_v57, 0.0 }
  0x67   :  { %v301_v34 = vadd.f32 %v300_v63, %v278_v53  ;;  %v287_v9 = vsel %vm271_vm12, %v729_v8, 0.0  ;;  %v310_v46 = vmul.f32 %v696_v17, %v286_v4  ;;  %v323_v35 = vadd.f32 %v284_v14, %v283_v52 }
  0x68   :  { %v315_v2 = vadd.f32 %v308_v22, %v307_v58  ;;  %v334_v44 = vadd.f32 %v333_v56, %v295_v0  ;;  %v281_v43 = vsel %vm273_vm14, %v238_v61, 0.0  ;;  %v288_v49 = vsel %vm272_vm13, %v735_v25, 0.0 }
  0x69   :  { %v302_v48 = vadd.f32 %v301_v34, %v279_v21  ;;  %v296_v51 = vsel %vm272_vm13, %v578_v50, 0.0  ;;  %v311_v59 = vmul.f32 %v295_v0, %v287_v9  ;;  %v324_v8 = vadd.f32 %v323_v35, %v285_v62 }
  0x6a   :  { %v316_v47 = vadd.f32 %v315_v2, %v309_v5  ;;  %v335_v6 = vadd.f32 %v334_v44, %v296_v51  ;;  %v282_v17 = vsel %vm274_vm15, %v239_v20, 0.0  ;;  %v289_v1 = vsel %vm273_vm14, %v863_v15, 0.0 }
  0x6b   :  { %v303_v45 = vadd.f32 %v302_v48, %v280_v39  ;;  %v297_v25 = vsel %vm273_vm14, %v583_v54, 0.0  ;;  %v312_v16 = vmul.f32 %v296_v51, %v288_v49  ;;  %v325_v33 = vadd.f32 %v324_v8, %v286_v4 }
  0x6c   :  { %v317_v7 = vadd.f32 %v316_v47, %v310_v46  ;;  %v336_v50 = vadd.f32 %v335_v6, %v297_v25  ;;  %v290_v26 = vsel %vm274_vm15, %v864_v19, 0.0  ;;  %v298_v10 = vsel %vm274_vm15, %v862_v42, 0.0 }
  0x6d   :  { %v304_v3 = vadd.f32 %v303_v45, %v281_v43  ;;  %v313_v23 = vmul.f32 %v297_v25, %v289_v1  ;;  %v326_v31 = vadd.f32 %v325_v33, %v287_v9  ;;  %v314_v36 = vmul.f32 %v298_v10, %v290_v26 }
  0x6e   :  { %v318_v29 = vadd.f32 %v317_v7, %v311_v59  ;;  %v337_v27 = vadd.f32 %v336_v50, %v298_v10 }
  0x6f   :  { %v305_v28 = vadd.f32 %v304_v3, %v282_v17  ;;  %v327_v12 = vadd.f32 %v326_v31, %v288_v49 }
  0x70   :  { %v319_v54 = vadd.f32 %v318_v29, %v312_v16  ;;  %342 = vst [vmem:[#allocation7 + $0x18] sm:$0xff] %v337_v27 }
  0x71   :  { %339 = vst [vmem:[#allocation7] sm:$0xff] %v305_v28  ;;  %v328_v30 = vadd.f32 %v327_v12, %v289_v1 }
  0x72   :  { %v320_v18 = vadd.f32 %v319_v54, %v313_v23 }
  0x73   :  { %v329_v38 = vadd.f32 %v328_v30, %v290_v26 }
  0x74   :  { %v321_v40 = vadd.f32 %v320_v18, %v314_v36 }
  0x75   :  { %341 = vst [vmem:[#allocation7 + $0x10] sm:$0xff] %v329_v38 }
  0x76   :  { %340 = vst [vmem:[#allocation7 + $0x8] sm:$0xff] %v321_v40 }
  0x77   :  { %469 = shalt.err (!%p466_p6)
}
  0x78   :  { %s470_s12 = scalar_lea.hbm %s851_s2, 512 }
  0x79   :  { %p471_p7 = scmp.ne.s32.totalorder %s851_s2, %s470_s12  ;;  %p474_p8 = scmp.lt.u32.totalorder %s470_s12, %s851_s2 }
  0x7b   :  { %p476_p9 = pnand %p474_p8, %p471_p7 }
  0x7d   :  { %479 = shalt.err (!%p476_p9)
}
  0x7e   :  { %354 = dma.vmem_to_hbm [thread:$0]  %s349_s8, 512, %s851_s2, [#allocation4], %s487_s20, %s487_s20, %s488_s21  }
  0x7f   :  { %484 = dma.done.wait [#allocation4], 512  }
  0x80   :  { %485 = vsyncadd [#allocation4], 4294966784 }
  0x81   :  { %358 = vsyncpa [#allocation3], 1 }
  0x82   :  { %359 = vsyncpa [#allocation6], 1 }
  0x83   :  { %360 = vsyncpa [#allocation4], 1 }

</bundles_post_ra>
